<compile_context>
chip_gen: v7x
topology: tpu7x:2x2x1
jax: 0.10.0
libtpu: 0.0.40
codegen_flags: <defaults>
</compile_context>

<pallas_src>
import functools

import jax
import jax.numpy as jnp
from jax.experimental import pallas as pl
from jax.experimental.pallas import tpu as pltpu


def selective_loss_kernel(pred_ref, aux_ref, w_ref, tgt_ref, out_ref, acc_ref, *,
                          coverage, lm, alpha, batch_size, tile_rows):
    i = pl.program_id(0)

    @pl.when(i == 0)
    def _init():
        acc_ref[0] = jnp.float32(0.0)   # sum(weights)
        acc_ref[1] = jnp.float32(0.0)   # sum(ce_pred * weights)
        acc_ref[2] = jnp.float32(0.0)   # sum(ce_aux)

    # Cast AFTER the block is in VMEM (inputs arrive in native dtype).
    pred = pred_ref[...].astype(jnp.float32)       # (TB, C)
    aux = aux_ref[...].astype(jnp.float32)         # (TB, C)
    w = w_ref[...].astype(jnp.float32)             # (TB, 1)
    tgt = tgt_ref[...].astype(jnp.int32)           # (TB, 1)

    tb, c = pred.shape

    # Row-validity mask for the (possibly partial / padded) last tile.
    row_ids = jax.lax.broadcasted_iota(jnp.int32, (tb, 1), 0) + i * tile_rows
    valid = row_ids < batch_size                   # (TB, 1) bool

    # Shared one-hot mask, reused for both CE computations.
    classes = jax.lax.broadcasted_iota(jnp.int32, (tb, c), 1)
    onehot = (classes == tgt).astype(jnp.float32)  # (TB, C)

    def ce(logits):
        # -log_softmax(logits)[target] = m + log(sum(exp(logits - m))) - logits[target]
        m = jnp.max(logits, axis=-1, keepdims=True)
        lse = jnp.log(jnp.sum(jnp.exp(logits - m), axis=-1, keepdims=True))
        tgt_logit = jnp.sum(onehot * logits, axis=-1, keepdims=True)
        return m + lse - tgt_logit                 # (TB, 1)

    zero = jnp.float32(0.0)
    wv = jnp.where(valid, w, zero)                 # masked weights
    ce_pred = jnp.where(valid, ce(pred), zero)     # where() (a select), so padded
    ce_aux = jnp.where(valid, ce(aux), zero)       # garbage can never poison sums

    acc_ref[0] += jnp.sum(wv)
    acc_ref[1] += jnp.sum(ce_pred * wv)
    acc_ref[2] += jnp.sum(ce_aux)

    @pl.when(i == pl.num_programs(0) - 1)
    def _finalize():
        inv_b = jnp.float32(1.0 / batch_size)      # divide by the TRUE batch size
        emp_coverage = acc_ref[0] * inv_b
        ce_risk = acc_ref[1] * inv_b
        aux_loss = acc_ref[2] * inv_b
        emp_risk = ce_risk / (emp_coverage + 1e-12)
        penalty = jnp.float32(lm) * jnp.maximum(
            jnp.float32(coverage) - emp_coverage, jnp.float32(0.0)) ** 2
        selective_loss = emp_risk + penalty
        total_loss = (jnp.float32(alpha) * selective_loss
                      + jnp.float32(1.0 - alpha) * aux_loss)
        out_ref[0] = selective_loss
        out_ref[1] = emp_coverage
        out_ref[2] = ce_risk
        out_ref[3] = emp_risk
        out_ref[4] = penalty
        out_ref[5] = aux_loss
        out_ref[6] = total_loss
        out_ref[7] = jnp.float32(0.0)  # pad


def _round_up(x, m):
    return ((x + m - 1) // m) * m


def _choose_tile_rows(batch, num_classes, itemsize):
    """Batch-tile size: multiple of 8, capped so one (TB, C) logits block <= ~2 MiB.
    With 2 tiled logit inputs x 2 pipeline buffers this stays inside the v5e
    16 MiB scoped-VMEM default and far under v7x's 64 MiB physical VMEM, while
    still being large enough (hundreds of rows for typical C) to amortize the
    ~0.35 us per-grid-step overhead."""
    padded_b = _round_up(max(batch, 1), 8)
    byte_cap = max(8, ((2 * 1024 * 1024) // max(1, num_classes * itemsize)) // 8 * 8)
    return max(8, min(padded_b, 1024, byte_cap))


def selective_net_loss(outputs, target, *, iteration=1, coverage=0.7, lm=32.0,
                       alpha=0.5, prev_selection_outs=None, tile_rows=None):
    """JAX/Pallas equivalent of SelectiveNetLoss.forward."""
    pred = outputs['prediction_out']                       # (B, C), native dtype
    aux = outputs['out_aux']                               # (B, C), native dtype
    sel = outputs['selection_out'].reshape(-1, 1)          # (B, 1), native dtype
    if prev_selection_outs is None:
        prev_selection_outs = []

    # Glue: pi-product over the Python list of previous selections (tiny, (B,1)).
    if iteration == 1:
        weights = sel
    else:
        pi = jnp.ones_like(sel, dtype=jnp.float32)
        for prev in prev_selection_outs:
            pi = pi * (1.0 - prev.astype(jnp.float32).reshape(-1, 1))
        weights = pi * sel.astype(jnp.float32)

    tgt = target.astype(jnp.int32).reshape(-1, 1)          # (B, 1)

    b, c = pred.shape
    itemsize = max(jnp.dtype(pred.dtype).itemsize, jnp.dtype(aux.dtype).itemsize)
    tb = tile_rows if tile_rows is not None else _choose_tile_rows(b, c, itemsize)
    tb = max(8, _round_up(int(tb), 8))
    grid = (pl.cdiv(b, tb),)

    kernel = functools.partial(
        selective_loss_kernel,
        coverage=float(coverage), lm=float(lm), alpha=float(alpha),
        batch_size=int(b), tile_rows=int(tb))

    logits_block_bytes = tb * c * itemsize
    vmem_limit = int(min(max(4 * logits_block_bytes + (2 << 20), 4 << 20), 32 << 20))

    bytes_accessed = int(
        b * c * (jnp.dtype(pred.dtype).itemsize + jnp.dtype(aux.dtype).itemsize)
        + b * (jnp.dtype(weights.dtype).itemsize + 4) + 8 * 4)
    cost = pl.CostEstimate(flops=12 * b * c, transcendentals=2 * b * c,
                           bytes_accessed=bytes_accessed)

    out = pl.pallas_call(
        kernel,
        out_shape=jax.ShapeDtypeStruct((8,), jnp.float32),
        grid=grid,
        in_specs=[
            pl.BlockSpec((tb, c), lambda i: (i, 0)),   # prediction_out
            pl.BlockSpec((tb, c), lambda i: (i, 0)),   # out_aux
            pl.BlockSpec((tb, 1), lambda i: (i, 0)),   # weights
            pl.BlockSpec((tb, 1), lambda i: (i, 0)),   # targets
        ],
        out_specs=pl.BlockSpec(memory_space=pltpu.MemorySpace.SMEM),
        scratch_shapes=[pltpu.SMEM((3,), jnp.float32)],
        compiler_params=pltpu.CompilerParams(
            dimension_semantics=("arbitrary",),
            vmem_limit_bytes=vmem_limit),
        cost_estimate=cost,
    )(pred, aux, weights, tgt)

    return {
        'selective_loss': out[0],
        'emp_coverage': out[1],
        'CE_risk': out[2],
        'emp_risk': out[3],
        'cov_penalty': out[4],
        'aux_loss': out[5],
        'target_loss': out[6],
    }


def _reference(outputs, target, *, coverage, lm, alpha, iteration=1,
               prev_selection_outs=None):
    """Pure-JAX reference mirroring the PyTorch module."""
    pred = outputs['prediction_out'].astype(jnp.float32)
    aux = outputs['out_aux'].astype(jnp.float32)
    sel = outputs['selection_out'].astype(jnp.float32).reshape(-1)
    tgt = target.astype(jnp.int32)

    if iteration == 1:
        weights = sel
    else:
        pi = jnp.ones_like(sel)
        for prev in (prev_selection_outs or []):
            pi = pi * (1.0 - prev.astype(jnp.float32).reshape(-1))
        weights = pi * sel

    def ce(logits, t):
        logp = jax.nn.log_softmax(logits, axis=-1)
        return -jnp.take_along_axis(logp, t[:, None], axis=-1)[:, 0]

    emp_cov = jnp.mean(weights)
    ce_risk = jnp.mean(ce(pred, tgt) * weights)
    emp_risk = ce_risk / (emp_cov + 1e-12)
    penalty = lm * jnp.maximum(coverage - emp_cov, 0.0) ** 2
    sel_loss = emp_risk + penalty
    aux_loss = jnp.mean(ce(aux, tgt))
    total = alpha * sel_loss + (1 - alpha) * aux_loss
    return {'selective_loss': sel_loss, 'emp_coverage': emp_cov,
            'CE_risk': ce_risk, 'emp_risk': emp_risk, 'cov_penalty': penalty,
            'aux_loss': aux_loss, 'target_loss': total}


if __name__ == "__main__":
    cfg = dict(coverage=0.7, lm=32.0, alpha=0.5)

    # ---- Test 1: f32 inputs, single tile -----------------------------------
    B, C = 8, 32
    k1, k2, k3, k4 = jax.random.split(jax.random.PRNGKey(0), 4)
    outputs = {
        'prediction_out': jax.random.normal(k1, (B, C), dtype=jnp.float32),
        'out_aux': jax.random.normal(k2, (B, C), dtype=jnp.float32),
        'selection_out': jax.nn.sigmoid(jax.random.normal(k3, (B, 1), dtype=jnp.float32)),
    }
    target = jax.random.randint(k4, (B,), 0, C, dtype=jnp.int32)

    res = jax.block_until_ready(selective_net_loss(outputs, target, iteration=1, **cfg))
    ref = _reference(outputs, target, iteration=1, **cfg)
    for k in res:
        assert jnp.allclose(res[k], ref[k], rtol=1e-5, atol=1e-5), (k, res[k], ref[k])

    # ---- Test 2: multi-tile + partial last tile + iteration > 1 ------------
    B2, C2 = 20, 48
    k5, k6, k7, k8, k9 = jax.random.split(jax.random.PRNGKey(0), 5)
    outputs2 = {
        'prediction_out': jax.random.normal(k5, (B2, C2), dtype=jnp.float32),
        'out_aux': jax.random.normal(k6, (B2, C2), dtype=jnp.float32),
        'selection_out': jax.nn.sigmoid(jax.random.normal(k7, (B2, 1), dtype=jnp.float32)),
    }
    target2 = jax.random.randint(k8, (B2,), 0, C2, dtype=jnp.int32)
    prev = [jax.nn.sigmoid(jax.random.normal(k9, (B2, 1), dtype=jnp.float32))]

    res2 = jax.block_until_ready(selective_net_loss(
        outputs2, target2, iteration=2, prev_selection_outs=prev,
        tile_rows=8, **cfg))
    ref2 = _reference(outputs2, target2, iteration=2, prev_selection_outs=prev, **cfg)
    for k in res2:
        assert jnp.allclose(res2[k], ref2[k], rtol=1e-5, atol=1e-5), (k, res2[k], ref2[k])

    # ---- Test 3: native bf16 inputs (in-kernel cast path) -------------------
    outputs_bf16 = {k: v.astype(jnp.bfloat16) for k, v in outputs.items()}
    res3 = jax.block_until_ready(selective_net_loss(outputs_bf16, target, iteration=1, **cfg))
    ref3 = _reference({k: v.astype(jnp.float32) for k, v in outputs_bf16.items()},
                      target, iteration=1, **cfg)
    for k in res3:
        assert jnp.allclose(res3[k], ref3[k], rtol=1e-4, atol=1e-4), (k, res3[k], ref3[k])

    print("KERNEL_OK")
</pallas_src>

<mosaic_0001>
module attributes {stable_mosaic.version = 11 : i64} {
  func.func @selective_loss_kernel(%arg0: i32, %arg1: memref<8x32xf32, #tpu.memory_space<vmem>>, %arg2: memref<8x32xf32, #tpu.memory_space<vmem>>, %arg3: memref<8x1xf32, #tpu.memory_space<vmem>>, %arg4: memref<8x1xi32, #tpu.memory_space<vmem>>, %arg5: memref<8xf32, #tpu.memory_space<smem>>, %arg6: memref<3xf32, #tpu.memory_space<smem>>) attributes {dimension_semantics = [#tpu.dimension_semantics<arbitrary>], iteration_bounds = array<i64: 1>, scalar_prefetch = 0 : i64, scratch_operands = 1 : i64, tpu.core_type = #tpu.core_type<tc>, window_params = [{transform_indices = @transform_0, window_bounds = array<i64: 8, 32>}, {transform_indices = @transform_1, window_bounds = array<i64: 8, 32>}, {transform_indices = @transform_2, window_bounds = array<i64: 8, 1>}, {transform_indices = @transform_3, window_bounds = array<i64: 8, 1>}, {transform_indices = @transform_4, window_bounds = array<i64: 8>}]} {
    %c0_i32 = arith.constant 0 : i32
    %0 = arith.cmpi eq, %arg0, %c0_i32 : i32
    %1 = arith.extui %0 : i1 to i32
    %c0_i32_0 = arith.constant 0 : i32
    %2 = arith.cmpi ne, %1, %c0_i32_0 : i32
    scf.if %2 {
      %cst_26 = arith.constant 0.000000e+00 : f32
      %c0_27 = arith.constant 0 : index
      %75 = memref.load %arg6[%c0_27] : memref<3xf32, #tpu.memory_space<smem>>
      memref.store %cst_26, %arg6[%c0_27] : memref<3xf32, #tpu.memory_space<smem>>
      %cst_28 = arith.constant 0.000000e+00 : f32
      %c1_29 = arith.constant 1 : index
      %76 = memref.load %arg6[%c1_29] : memref<3xf32, #tpu.memory_space<smem>>
      memref.store %cst_28, %arg6[%c1_29] : memref<3xf32, #tpu.memory_space<smem>>
      %cst_30 = arith.constant 0.000000e+00 : f32
      %c2_31 = arith.constant 2 : index
      %77 = memref.load %arg6[%c2_31] : memref<3xf32, #tpu.memory_space<smem>>
      memref.store %cst_30, %arg6[%c2_31] : memref<3xf32, #tpu.memory_space<smem>>
    } else {
    }
    %c0 = arith.constant 0 : index
    %c0_1 = arith.constant 0 : index
    %3 = vector.load %arg1[%c0, %c0_1] : memref<8x32xf32, #tpu.memory_space<vmem>>, vector<8x32xf32>
    %c0_2 = arith.constant 0 : index
    %c0_3 = arith.constant 0 : index
    %4 = vector.load %arg2[%c0_2, %c0_3] : memref<8x32xf32, #tpu.memory_space<vmem>>, vector<8x32xf32>
    %c0_4 = arith.constant 0 : index
    %c0_5 = arith.constant 0 : index
    %5 = vector.load %arg3[%c0_4, %c0_5] : memref<8x1xf32, #tpu.memory_space<vmem>>, vector<8x1xf32>
    %c0_6 = arith.constant 0 : index
    %c0_7 = arith.constant 0 : index
    %6 = vector.load %arg4[%c0_6, %c0_7] : memref<8x1xi32, #tpu.memory_space<vmem>>, vector<8x1xi32>
    %7 = tpu.iota {dimensions = array<i32: 0>} : vector<8x1xi32>
    %c8_i32 = arith.constant 8 : i32
    %8 = arith.muli %arg0, %c8_i32 : i32
    %9 = vector.broadcast %8 : i32 to vector<8x1xi32>
    %10 = arith.addi %7, %9 : vector<8x1xi32>
    %c8_i32_8 = arith.constant 8 : i32
    %11 = vector.broadcast %c8_i32_8 : i32 to vector<8x1xi32>
    %12 = arith.cmpi slt, %10, %11 : vector<8x1xi32>
    %13 = tpu.iota {dimensions = array<i32: 1>} : vector<8x32xi32>
    %14 = vector.broadcast %6 : vector<8x1xi32> to vector<8x32xi32>
    %15 = arith.cmpi eq, %13, %14 : vector<8x32xi32>
    %16 = arith.extui %15 : vector<8x32xi1> to vector<8x32xi32>
    %17 = arith.sitofp %16 : vector<8x32xi32> to vector<8x32xf32>
    %cst = arith.constant 0.000000e+00 : f32
    %18 = vector.broadcast %cst : f32 to vector<8x1xf32>
    %19 = arith.select %12, %5, %18 : vector<8x1xi1>, vector<8x1xf32>
    %cst_9 = arith.constant dense<0xFF800000> : vector<8xf32>
    %20 = vector.multi_reduction <maximumf>, %3, %cst_9 [1] : vector<8x32xf32> to vector<8xf32>
    %21 = vector.shape_cast %20 : vector<8xf32> to vector<8x1xf32>
    %22 = vector.broadcast %21 : vector<8x1xf32> to vector<8x32xf32>
    %23 = arith.subf %3, %22 : vector<8x32xf32>
    %24 = math.exp %23 : vector<8x32xf32>
    %cst_10 = arith.constant dense<0.000000e+00> : vector<8xf32>
    %25 = vector.multi_reduction <add>, %24, %cst_10 [1] : vector<8x32xf32> to vector<8xf32>
    %26 = vector.shape_cast %25 : vector<8xf32> to vector<8x1xf32>
    %27 = math.log %26 : vector<8x1xf32>
    %28 = arith.mulf %17, %3 : vector<8x32xf32>
    %cst_11 = arith.constant dense<0.000000e+00> : vector<8xf32>
    %29 = vector.multi_reduction <add>, %28, %cst_11 [1] : vector<8x32xf32> to vector<8xf32>
    %30 = vector.shape_cast %29 : vector<8xf32> to vector<8x1xf32>
    %31 = arith.addf %21, %27 : vector<8x1xf32>
    %32 = arith.subf %31, %30 : vector<8x1xf32>
    %cst_12 = arith.constant 0.000000e+00 : f32
    %33 = vector.broadcast %cst_12 : f32 to vector<8x1xf32>
    %34 = arith.select %12, %32, %33 : vector<8x1xi1>, vector<8x1xf32>
    %cst_13 = arith.constant dense<0xFF800000> : vector<8xf32>
    %35 = vector.multi_reduction <maximumf>, %4, %cst_13 [1] : vector<8x32xf32> to vector<8xf32>
    %36 = vector.shape_cast %35 : vector<8xf32> to vector<8x1xf32>
    %37 = vector.broadcast %36 : vector<8x1xf32> to vector<8x32xf32>
    %38 = arith.subf %4, %37 : vector<8x32xf32>
    %39 = math.exp %38 : vector<8x32xf32>
    %cst_14 = arith.constant dense<0.000000e+00> : vector<8xf32>
    %40 = vector.multi_reduction <add>, %39, %cst_14 [1] : vector<8x32xf32> to vector<8xf32>
    %41 = vector.shape_cast %40 : vector<8xf32> to vector<8x1xf32>
    %42 = math.log %41 : vector<8x1xf32>
    %43 = arith.mulf %17, %4 : vector<8x32xf32>
    %cst_15 = arith.constant dense<0.000000e+00> : vector<8xf32>
    %44 = vector.multi_reduction <add>, %43, %cst_15 [1] : vector<8x32xf32> to vector<8xf32>
    %45 = vector.shape_cast %44 : vector<8xf32> to vector<8x1xf32>
    %46 = arith.addf %36, %42 : vector<8x1xf32>
    %47 = arith.subf %46, %45 : vector<8x1xf32>
    %cst_16 = arith.constant 0.000000e+00 : f32
    %48 = vector.broadcast %cst_16 : f32 to vector<8x1xf32>
    %49 = arith.select %12, %47, %48 : vector<8x1xi1>, vector<8x1xf32>
    %c0_17 = arith.constant 0 : index
    %50 = memref.load %arg6[%c0_17] : memref<3xf32, #tpu.memory_space<smem>>
    %51 = vector.shape_cast %19 : vector<8x1xf32> to vector<1x8x1xf32>
    %cst_18 = arith.constant dense<0.000000e+00> : vector<1xf32>
    %52 = vector.multi_reduction <add>, %51, %cst_18 [1, 2] : vector<1x8x1xf32> to vector<1xf32>
    %53 = vector.shape_cast %52 : vector<1xf32> to vector<1x1x1xf32>
    %54 = vector.extract %53[0, 0, 0] : f32 from vector<1x1x1xf32>
    %55 = arith.addf %50, %54 : f32
    %c0_19 = arith.constant 0 : index
    %56 = memref.load %arg6[%c0_19] : memref<3xf32, #tpu.memory_space<smem>>
    memref.store %55, %arg6[%c0_19] : memref<3xf32, #tpu.memory_space<smem>>
    %c1 = arith.constant 1 : index
    %57 = memref.load %arg6[%c1] : memref<3xf32, #tpu.memory_space<smem>>
    %58 = arith.mulf %34, %19 : vector<8x1xf32>
    %59 = vector.shape_cast %58 : vector<8x1xf32> to vector<1x8x1xf32>
    %cst_20 = arith.constant dense<0.000000e+00> : vector<1xf32>
    %60 = vector.multi_reduction <add>, %59, %cst_20 [1, 2] : vector<1x8x1xf32> to vector<1xf32>
    %61 = vector.shape_cast %60 : vector<1xf32> to vector<1x1x1xf32>
    %62 = vector.extract %61[0, 0, 0] : f32 from vector<1x1x1xf32>
    %63 = arith.addf %57, %62 : f32
    %c1_21 = arith.constant 1 : index
    %64 = memref.load %arg6[%c1_21] : memref<3xf32, #tpu.memory_space<smem>>
    memref.store %63, %arg6[%c1_21] : memref<3xf32, #tpu.memory_space<smem>>
    %c2 = arith.constant 2 : index
    %65 = memref.load %arg6[%c2] : memref<3xf32, #tpu.memory_space<smem>>
    %66 = vector.shape_cast %49 : vector<8x1xf32> to vector<1x8x1xf32>
    %cst_22 = arith.constant dense<0.000000e+00> : vector<1xf32>
    %67 = vector.multi_reduction <add>, %66, %cst_22 [1, 2] : vector<1x8x1xf32> to vector<1xf32>
    %68 = vector.shape_cast %67 : vector<1xf32> to vector<1x1x1xf32>
    %69 = vector.extract %68[0, 0, 0] : f32 from vector<1x1x1xf32>
    %70 = arith.addf %65, %69 : f32
    %c2_23 = arith.constant 2 : index
    %71 = memref.load %arg6[%c2_23] : memref<3xf32, #tpu.memory_space<smem>>
    memref.store %70, %arg6[%c2_23] : memref<3xf32, #tpu.memory_space<smem>>
    %c0_i32_24 = arith.constant 0 : i32
    %72 = arith.cmpi eq, %arg0, %c0_i32_24 : i32
    %73 = arith.extui %72 : i1 to i32
    %c0_i32_25 = arith.constant 0 : i32
    %74 = arith.cmpi ne, %73, %c0_i32_25 : i32
    scf.if %74 {
      %c0_26 = arith.constant 0 : index
      %75 = memref.load %arg6[%c0_26] : memref<3xf32, #tpu.memory_space<smem>>
      %cst_27 = arith.constant 1.250000e-01 : f32
      %76 = arith.mulf %75, %cst_27 : f32
      %c1_28 = arith.constant 1 : index
      %77 = memref.load %arg6[%c1_28] : memref<3xf32, #tpu.memory_space<smem>>
      %cst_29 = arith.constant 1.250000e-01 : f32
      %78 = arith.mulf %77, %cst_29 : f32
      %c2_30 = arith.constant 2 : index
      %79 = memref.load %arg6[%c2_30] : memref<3xf32, #tpu.memory_space<smem>>
      %cst_31 = arith.constant 1.250000e-01 : f32
      %80 = arith.mulf %79, %cst_31 : f32
      %cst_32 = arith.constant 9.99999996E-13 : f32
      %81 = arith.addf %76, %cst_32 : f32
      %82 = arith.divf %78, %81 : f32
      %cst_33 = arith.constant 0.699999988 : f32
      %83 = arith.subf %cst_33, %76 : f32
      %cst_34 = arith.constant 0.000000e+00 : f32
      %84 = arith.maximumf %83, %cst_34 : f32
      %85 = arith.mulf %84, %84 : f32
      %cst_35 = arith.constant 3.200000e+01 : f32
      %86 = arith.mulf %cst_35, %85 : f32
      %87 = arith.addf %82, %86 : f32
      %cst_36 = arith.constant 5.000000e-01 : f32
      %88 = arith.mulf %cst_36, %87 : f32
      %cst_37 = arith.constant 5.000000e-01 : f32
      %89 = arith.mulf %cst_37, %80 : f32
      %90 = arith.addf %88, %89 : f32
      %c0_38 = arith.constant 0 : index
      %91 = memref.load %arg5[%c0_38] : memref<8xf32, #tpu.memory_space<smem>>
      memref.store %87, %arg5[%c0_38] : memref<8xf32, #tpu.memory_space<smem>>
      %c1_39 = arith.constant 1 : index
      %92 = memref.load %arg5[%c1_39] : memref<8xf32, #tpu.memory_space<smem>>
      memref.store %76, %arg5[%c1_39] : memref<8xf32, #tpu.memory_space<smem>>
      %c2_40 = arith.constant 2 : index
      %93 = memref.load %arg5[%c2_40] : memref<8xf32, #tpu.memory_space<smem>>
      memref.store %78, %arg5[%c2_40] : memref<8xf32, #tpu.memory_space<smem>>
      %c3 = arith.constant 3 : index
      %94 = memref.load %arg5[%c3] : memref<8xf32, #tpu.memory_space<smem>>
      memref.store %82, %arg5[%c3] : memref<8xf32, #tpu.memory_space<smem>>
      %c4 = arith.constant 4 : index
      %95 = memref.load %arg5[%c4] : memref<8xf32, #tpu.memory_space<smem>>
      memref.store %86, %arg5[%c4] : memref<8xf32, #tpu.memory_space<smem>>
      %c5 = arith.constant 5 : index
      %96 = memref.load %arg5[%c5] : memref<8xf32, #tpu.memory_space<smem>>
      memref.store %80, %arg5[%c5] : memref<8xf32, #tpu.memory_space<smem>>
      %c6 = arith.constant 6 : index
      %97 = memref.load %arg5[%c6] : memref<8xf32, #tpu.memory_space<smem>>
      memref.store %90, %arg5[%c6] : memref<8xf32, #tpu.memory_space<smem>>
      %cst_41 = arith.constant 0.000000e+00 : f32
      %c7 = arith.constant 7 : index
      %98 = memref.load %arg5[%c7] : memref<8xf32, #tpu.memory_space<smem>>
      memref.store %cst_41, %arg5[%c7] : memref<8xf32, #tpu.memory_space<smem>>
    } else {
    }
    return
  }
  func.func @transform_0(%arg0: i32) -> (i32, i32) {
    %c0_i32 = arith.constant 0 : i32
    %c0_i32_0 = arith.constant 0 : i32
    return %arg0, %c0_i32 : i32, i32
  }
  func.func @transform_1(%arg0: i32) -> (i32, i32) {
    %c0_i32 = arith.constant 0 : i32
    %c0_i32_0 = arith.constant 0 : i32
    return %arg0, %c0_i32 : i32, i32
  }
  func.func @transform_2(%arg0: i32) -> (i32, i32) {
    %c0_i32 = arith.constant 0 : i32
    %c0_i32_0 = arith.constant 0 : i32
    return %arg0, %c0_i32 : i32, i32
  }
  func.func @transform_3(%arg0: i32) -> (i32, i32) {
    %c0_i32 = arith.constant 0 : i32
    %c0_i32_0 = arith.constant 0 : i32
    return %arg0, %c0_i32 : i32, i32
  }
  func.func @transform_4(%arg0: i32) -> i32 {
    %c0_i32 = arith.constant 0 : i32
    %c0_i32_0 = arith.constant 0 : i32
    return %c0_i32 : i32
  }
}

</mosaic_0001>

<bundles_post_ra>
// kernel: tpu_custom_call.1
= control target key start
LH: loop header
LB: loop body
LE: loop exit
PB: predicated region body
PF: predicated region fallthrough
CT: control target
= control target key end

     0   :  { %vm47_vm0 = vcmask 261120   ;;  %v220_v4 = vmov 0   ;;  %s286_s0 = inlined_call_operand.vmem [shape: f32[8,32], index: 0, kind: input, shape index: {}]   ;;  %s287_s1 = inlined_call_operand.vmem [shape: f32[8,32], index: 1, kind: input, shape index: {}]   ;;  %s288_s2 = inlined_call_operand.vmem [shape: f32[8,1], index: 2, kind: input, shape index: {}]   ;;  %s289_s3 = inlined_call_operand.vmem [shape: s32[8,1], index: 3, kind: input, shape index: {}]   ;;  %s290_s4 = inlined_call_operand.hbm [shape: f32[8], index: 4, kind: output, shape index: {}]  }
   0x1   :  { %v28_v0 = vld [vmem:[%s286_s0] sm:$0xff]  ;;  %196 = vset.pattern.permute.xlu1 %v220_v4  ;;  %197 = vset.pattern.permute.xlu0 %v220_v4 }
   0x2   :  { %v29_v1 = vld [vmem:[%s287_s1] sm:$0xff]  ;;  %v48_v3 = vsel %vm47_vm0, %v28_v0, -inf }
   0x3   :  { %v31_v2 = vld [vmem:[%s289_s3] sm:$0xff] }
   0x4   :  { %9 = vsyncpa [#allocation4], 0  ;;  %49 = vmax.xlane.f32.xlu0 %v48_v3  ;;  %41 = vperm.xlu1 %196, %v31_v2   ;;  %v66_v5 = vsel %vm47_vm0, %v29_v1, -inf  ;;  %v38_v10 = vlaneseq  ;;  %v221_v16 = vmov 0.0   ;;  %v30_v25 = vld [vmem:[%s288_s2] sm:$0xff]  ;;  %vm85_vm2 = vcmask 7168  }
   0x5   :  { %v86_v26 = vsel %vm85_vm2, %v30_v25, 0.0  ;;  %s222_s2 = smov 0.0   ;;  %s208_s13 = scalar_lea.hbm %s290_s4, 16 }
   0x6   :  { %v39_v13 = vand.u32 127, %v38_v10  ;;  %165 = sst [smem:[#allocation3 + $0x7]] %s222_s2  ;;  %p209_p0 = scmp.ne.s32.totalorder %s290_s4, %s208_s13 }
   0x7   :  { %p212_p1 = scmp.lt.u32.totalorder %s208_s13, %s290_s4 }
   0x8   :  { %67 = vmax.xlane.f32.xlu0 %v66_v5 }
   0x9   :  { %p214_p2 = pnand %p212_p1, %p209_p0 }
  0x83   :  { %v42_v14 = vpop.permute.xlu1 %41 }
  0x84   :  { %vm43_vm1 = vcmp.eq.s32.totalorder %v39_v13, %v42_v14 }
  0x85   :  { %v179_v17 = vsel %vm43_vm1, 1.0, %v221_v16 }
  0x86   :  { %v59_v19 = vmul.f32 %v179_v17, %v28_v0  ;;  %v77_v23 = vmul.f32 %v179_v17, %v29_v1 }
  0x88   :  { %v60_v22 = vsel %vm47_vm0, %v59_v19, 0.0  ;;  %v78_v24 = vsel %vm47_vm0, %v77_v23, 0.0 }
  0x91   :  { %v50_v6 = vpop.xlane.xlu0 %49 }
  0x92   :  { %v51_v7 = vsub.f32 %v28_v0, %v50_v6 }
  0x94   :  { %v52_v8 = vmul.f32 1.442695, %v51_v7 }
  0x95   :  { %v68_v9 = vpop.xlane.xlu0 %67 }
  0x96   :  { %198 = vpow2.f32 %v52_v8  ;;  %v69_v11 = vsub.f32 %v29_v1, %v68_v9 }
  0x98   :  { %v70_v12 = vmul.f32 1.442695, %v69_v11 }
  0x9a   :  { %200 = vpow2.f32 %v70_v12 }
  0xa0   :  { %v199_v15 = vpop.eup %198 }
  0xa1   :  { %v54_v18 = vsel %vm47_vm0, %v199_v15, 0.0 }
  0xa2   :  { %55 = vadd.xlane.f32.xlu1 %v54_v18 }
  0xa4   :  { %v201_v20 = vpop.eup %200 }
  0xa5   :  { %v72_v21 = vsel %vm47_vm0, %v201_v20, 0.0 }
  0xa6   :  { %73 = vadd.xlane.f32.xlu0 %v72_v21 }
  0xaa   :  { %61 = vadd.xlane.f32.xlu0 %v60_v22 }
  0xae   :  { %79 = vadd.xlane.f32.xlu0 %v78_v24 }
  0xb2   :  { %87 = vadd.xlane.f32.xlu0 %v86_v26 }
 0x12f   :  { %v56_v27 = vpop.xlane.xlu1 %55 }
 0x130   :  { %202 = vlog2.f32 %v56_v27 }
 0x133   :  { %v74_v28 = vpop.xlane.xlu0 %73 }
 0x134   :  { %204 = vlog2.f32 %v74_v28 }
 0x137   :  { %v62_v29 = vpop.xlane.xlu0 %61 }
 0x13a   :  { %v203_v30 = vpop.eup %202 }
 0x13b   :  { %v58_v31 = vmul.f32 0.6931472, %v203_v30  ;;  %v80_v32 = vpop.xlane.xlu0 %79 }
 0x13d   :  { %v63_v33 = vadd.f32 %v58_v31, %v50_v6 }
 0x13e   :  { %v205_v34 = vpop.eup %204 }
 0x13f   :  { %v76_v35 = vmul.f32 0.6931472, %v205_v34  ;;  %v64_v36 = vsub.f32 %v63_v33, %v62_v29  ;;  %v88_v37 = vpop.xlane.xlu0 %87 }
 0x140   :  { %v89_v38 = vrot.slane %v88_v37, 4 }
 0x141   :  { %v81_v39 = vadd.f32 %v76_v35, %v68_v9  ;;  %v100_v40 = vmul.f32 %v64_v36, %v30_v25 }
 0x142   :  { %v90_v41 = vadd.f32 %v89_v38, %v88_v37 }
 0x143   :  { %v82_v42 = vsub.f32 %v81_v39, %v80_v32  ;;  %v101_v43 = vsel %vm85_vm2, %v100_v40, 0.0 }
 0x144   :  { %102 = vadd.xlane.f32.xlu0 %v101_v43  ;;  %v91_v44 = vrot.slane %v90_v41, 2 }
 0x145   :  { %v115_v46 = vsel %vm85_vm2, %v82_v42, 0.0 }
 0x146   :  { %v92_v45 = vadd.f32 %v91_v44, %v90_v41 }
 0x148   :  { %116 = vadd.xlane.f32.xlu0 %v115_v46  ;;  %v93_v47 = vrot.slane %v92_v45, 1 }
 0x14a   :  { %v94_v48 = vadd.f32 %v93_v47, %v92_v45 }
 0x14c   :  { %184 = vpush %v94_v48 }
 0x17d   :  { %s185_s3 = spop %184 }
 0x17e   :  { %s132_s21 = smul.f32 0.125, %s185_s3 }
 0x180   :  { %s142_s22 = ssub.f32 0.7, %s132_s21 }
 0x181   :  { %153 = sst [smem:[#allocation3 + $0x1]] %s132_s21 }
 0x182   :  { %s143_s23 = smax.f32 %s222_s2, %s142_s22  ;;  %s137_s26 = sadd.f32 1e-12, %s132_s21 }
 0x183   :  { %s144_s24 = smul.f32 %s143_s23, %s143_s23 }
 0x184   :  { %v138_v52 = vstv %s137_s26 }
 0x185   :  { %s270_s25 = smul.f32 32.0, %s144_s24  ;;  %206 = vrcp.f32 %v138_v52 }
 0x187   :  { %159 = sst [smem:[#allocation3 + $0x4]] %s270_s25 }
 0x18f   :  { %v207_v0 = vpop.eup %206 }
 0x1d1   :  { %v103_v49 = vpop.xlane.xlu0 %102 }
 0x1d2   :  { %v104_v50 = vrot.slane %v103_v49, 4 }
 0x1d4   :  { %v105_v51 = vadd.f32 %v104_v50, %v103_v49 }
 0x1d5   :  { %v117_v53 = vpop.xlane.xlu0 %116 }
 0x1d6   :  { %v106_v54 = vrot.slane %v105_v51, 2  ;;  %v118_v55 = vrot.slane %v117_v53, 4 }
 0x1d8   :  { %v119_v56 = vadd.f32 %v118_v55, %v117_v53  ;;  %v107_v57 = vadd.f32 %v106_v54, %v105_v51 }
 0x1da   :  { %v120_v58 = vrot.slane %v119_v56, 2  ;;  %v108_v59 = vrot.slane %v107_v57, 1 }
 0x1dc   :  { %v121_v60 = vadd.f32 %v120_v58, %v119_v56  ;;  %v109_v61 = vadd.f32 %v108_v59, %v107_v57 }
 0x1de   :  { %186 = vpush %v109_v61  ;;  %v122_v62 = vrot.slane %v121_v60, 1 }
 0x1e0   :  { %v123_v63 = vadd.f32 %v122_v62, %v121_v60 }
 0x1e2   :  { %188 = vpush %v123_v63 }
 0x1e3   :  { %190 = vpush %v207_v0 }
 0x20f   :  { %s187_s27 = spop %186 }
 0x210   :  { %s134_s28 = smul.f32 0.125, %s187_s27 }
 0x212   :  { %155 = sst [smem:[#allocation3 + $0x2]] %s134_s28 }
 0x213   :  { %s189_s29 = spop %188 }
 0x214   :  { %s136_s30 = smul.f32 0.125, %s189_s29  ;;  %s191_s5 = spop %190 }
 0x215   :  { %s141_s6 = smul.f32 %s191_s5, %s134_s28 }
 0x216   :  { %161 = sst [smem:[#allocation3 + $0x5]] %s136_s30  ;;  %s148_s8 = smul.f32 0.5, %s136_s30 }
 0x217   :  { %s146_s7 = sadd.f32 %s270_s25, %s141_s6 }
 0x218   :  { %157 = sst [smem:[#allocation3 + $0x3]] %s141_s6 }
 0x219   :  { %s147_s9 = smul.f32 0.5, %s146_s7  ;;  %151 = sst [smem:[#allocation3]] %s146_s7 }
 0x21b   :  { %s149_s10 = sadd.f32 %s148_s8, %s147_s9 }
 0x21d   :  { %163 = sst [smem:[#allocation3 + $0x6]] %s149_s10 }
 0x21e   :  { %217 = shalt.err (!%p214_p2)
}
 0x21f   :  { %s223_s18 = smov [#allocation3]  }
 0x220   :  { %173 = dma.smem_to_hbm %s223_s18, 16, %s290_s4, [#allocation4]  }
 0x221   :  { %218 = dma.done.wait [#allocation4], 16  }
 0x222   :  { %219 = vsyncadd [#allocation4], 4294967280 }
 0x223   :  { %177 = sfence }
 0x224   :  { %178 = vsyncpa [#allocation4], 1 }

</bundles_post_ra>
